<compile_context>
chip_gen: v7x
topology: tpu7x:2x2x1
jax: 0.10.0
libtpu: 0.0.40
codegen_flags: <defaults>
</compile_context>

<pallas_src>
import functools
import numpy as np
import jax
import jax.numpy as jnp
from jax import lax
from jax.experimental import pallas as pl
from jax.experimental.pallas import tpu as pltpu

# Protocol constants (from research/secure_inference_3pc/const.py).
# They only shift the mean before the DReLU sign; the sign is unchanged for
# in-range values, so the kernel consumes sign(block sum) directly.
NUM_OF_LSB_TO_IGNORE = 5
COMPARISON_NUM_BITS_IGNORED = 5

_LANES = 128
# ~2 MiB per pipeline buffer -> in+out double buffers stay well inside the
# 16 MiB default scoped VMEM on v5e (and trivially on v6e/v7x).
_VMEM_BUDGET_BYTES = 2 * 1024 * 1024


def _block_relu_kernel(x_ref, o_ref):
    """x_ref/o_ref: (B, S, 128) int32 tiles.  B = bh*bw block elements."""
    x = x_ref[...]                                  # (B, S, 128)
    s = jnp.sum(x, axis=0)                          # (S, 128): B-1 full-vreg VPU adds
    # DReLU on the block mean.  For d = bh*bw > 0, (sum // d) >= 0  <=>  sum >= 0,
    # and the protocol's (>> 5, << 5) pair preserves the sign (no int32 overflow
    # for in-range fixed-point values), so only the sign bit of the sum matters.
    keep = s >= 0                                   # (S, 128) bool
    o_ref[...] = jnp.where(keep[None, :, :], x, jnp.zeros_like(x))


def _lane_cols_per_step(B, Mt):
    """Pick S (columns of 128 lanes per grid step) and the grid length."""
    budget_cols = max(8, (_VMEM_BUDGET_BYTES // (B * _LANES * 4)) // 8 * 8)
    if Mt <= budget_cols:
        # Single block covering the full array (no (8,·) divisibility needed).
        return Mt, 1
    return budget_cols, pl.cdiv(Mt, budget_cols)


def _block_relu_group(x_bm):
    """Run the kernel over a (B, M) slab; returns a same-shape slab."""
    B, M = x_bm.shape
    Mt = pl.cdiv(M, _LANES)
    Mp = Mt * _LANES
    if Mp != M:
        # Only a ragged lane tail needs padding (zeros: sum=0 -> kept -> 0 out).
        x_bm = jnp.pad(x_bm, ((0, 0), (0, Mp - M)))
    x3 = x_bm.reshape(B, Mt, _LANES)                # free reshape (last dim split)

    S, grid = _lane_cols_per_step(B, Mt)
    out = pl.pallas_call(
        _block_relu_kernel,
        out_shape=jax.ShapeDtypeStruct((B, Mt, _LANES), x_bm.dtype),
        grid_spec=pltpu.PrefetchScalarGridSpec(
            num_scalar_prefetch=0,
            grid=(grid,),
            in_specs=[pl.BlockSpec((B, S, _LANES), lambda i: (0, i, 0))],
            out_specs=pl.BlockSpec((B, S, _LANES), lambda i: (0, i, 0)),
        ),
        compiler_params=pltpu.CompilerParams(
            dimension_semantics=("parallel",),
            vmem_limit_bytes=32 * 1024 * 1024,
        ),
    )(x3)

    out = out.reshape(B, Mp)
    if Mp != M:
        out = out[:, :M]
    return out


def _space_to_depth_bm(x, bh, bw):
    """(N, Cg, Hp, Wp) -> (bh*bw, N*Cg*Hb*Wb)."""
    N, C, H, W = x.shape
    x = x.reshape(N, C, H // bh, bh, W // bw, bw)
    x = jnp.transpose(x, (3, 5, 0, 1, 2, 4))        # (bh, bw, N, C, Hb, Wb)
    return x.reshape(bh * bw, N * C * (H // bh) * (W // bw))


def _depth_to_space_from_bm(x_bm, N, C, Hp, Wp, bh, bw):
    """(bh*bw, N*C*Hb*Wb) -> (N, C, Hp, Wp)."""
    x = x_bm.reshape(bh, bw, N, C, Hp // bh, Wp // bw)
    x = jnp.transpose(x, (2, 3, 4, 0, 5, 1))        # (N, C, Hb, bh, Wb, bw)
    return x.reshape(N, C, Hp, Wp)


class SecureOptimizedBlockReLU:
    """JAX/Pallas port of the PyTorch module (plaintext semantics of the 3PC protocol)."""

    def __init__(self, block_sizes):
        self.block_sizes = np.array(block_sizes)
        unique = np.unique(self.block_sizes, axis=0)
        self.active_block_sizes = np.array(
            [bs for bs in unique if 0 not in bs]
        ).reshape(-1, 2)
        self.active_block_sizes_to_channels = [
            np.where(np.all(self.block_sizes == bs, axis=1))[0]
            for bs in self.active_block_sizes
        ]
        self.is_identity_channels = np.array([0 in bs for bs in self.block_sizes])

        # Static channel re-assembly: output is one concat over
        # [group0 | group1 | ... | identity channels] followed by one gather.
        order = []
        for ch in self.active_block_sizes_to_channels:
            order.extend(ch.tolist())
        order.extend(np.where(self.is_identity_channels)[0].tolist())
        order = np.array(order, dtype=np.int32)
        inv = np.empty_like(order)
        inv[order] = np.arange(order.shape[0], dtype=np.int32)
        self._gather_perm = inv
        self._perm_is_identity = bool(np.array_equal(order, np.arange(order.shape[0])))

    def __call__(self, activation):
        # activation: (N, C, H, W) int32 (NCHW, fixed-point)
        if self.block_sizes.size and np.all(self.block_sizes == [0, 1]):
            return activation
        N, C, H, W = activation.shape

        pieces = []
        for bs, channels in zip(self.active_block_sizes, self.active_block_sizes_to_channels):
            bh, bw = int(bs[0]), int(bs[1])
            cur = jnp.take(activation, channels, axis=1)            # (N, Cg, H, W)
            pad_h = (bh - H % bh) % bh
            pad_w = (bw - W % bw) % bw
            if pad_h or pad_w:                                       # PadHandler.pad
                cur = jnp.pad(cur, ((0, 0), (0, 0), (0, pad_h), (0, pad_w)))
            Hp, Wp = H + pad_h, W + pad_w
            x_bm = _space_to_depth_bm(cur, bh, bw)                   # SpaceToDepth (glue)
            y_bm = _block_relu_group(x_bm)                           # Pallas hot path
            y = _depth_to_space_from_bm(y_bm, N, len(channels), Hp, Wp, bh, bw)
            if pad_h or pad_w:                                       # PadHandler.unpad
                y = y[:, :, :H, :W]
            pieces.append(y)

        id_idx = np.where(self.is_identity_channels)[0]
        if id_idx.size:
            pieces.append(jnp.take(activation, id_idx, axis=1))      # identity channels
        if not pieces:
            return activation

        stacked = pieces[0] if len(pieces) == 1 else jnp.concatenate(pieces, axis=1)
        if self._perm_is_identity:
            return stacked
        return jnp.take(stacked, self._gather_perm, axis=1)
        # TODO(synk): fold all block-size groups into one grouped pallas_call
        # (PrefetchScalarGridSpec with per-group offsets) to amortize dispatch
        # for many-group / tiny-activation cases.


def _reference(x, block_sizes):
    """Pure-numpy reference of the plaintext block-ReLU forward (full protocol formula)."""
    x = np.asarray(x)
    out = x.copy()
    N, C, H, W = x.shape
    for c, (bh, bw) in enumerate(block_sizes):
        if bh == 0 or bw == 0:
            continue
        pad_h = (bh - H % bh) % bh
        pad_w = (bw - W % bw) % bw
        xp = np.pad(x[:, c], ((0, 0), (0, pad_h), (0, pad_w)))
        Hp, Wp = H + pad_h, W + pad_w
        xr = xp.reshape(N, Hp // bh, bh, Wp // bw, bw)
        s = xr.sum(axis=(2, 4))
        mean = s // (bh * bw)
        mean = (mean >> NUM_OF_LSB_TO_IGNORE) << COMPARISON_NUM_BITS_IGNORED
        sign = mean >= 0
        sign_up = np.repeat(np.repeat(sign, bh, axis=1), bw, axis=2)[:, :H, :W]
        out[:, c] = x[:, c] * sign_up
    return out


if __name__ == "__main__":
    key = jax.random.PRNGKey(0)
    N, C, H, W = 2, 4, 16, 16
    # per-channel block sizes: channel 2 is an identity channel (contains 0)
    block_sizes = [[2, 2], [4, 4], [0, 1], [2, 2]]

    x = jax.random.randint(key, (N, C, H, W), -1000, 1000, dtype=jnp.int32)

    module = SecureOptimizedBlockReLU(block_sizes)
    fwd = jax.jit(lambda a: module(a))   # let XLA fuse the pad/transpose/assembly glue
    y = fwd(x)
    y = jax.block_until_ready(y)

    ref = _reference(np.asarray(x), block_sizes)
    assert y.shape == x.shape and y.dtype == x.dtype
    assert np.array_equal(np.asarray(y), ref), "Pallas bReLU mismatch vs reference"

    print("KERNEL_OK")
</pallas_src>

<mosaic_0001>
module attributes {stable_mosaic.version = 11 : i64} {
  func.func @_block_relu_kernel(%arg0: i32, %arg1: memref<16x1x128xi32, #tpu.memory_space<vmem>>, %arg2: memref<16x1x128xi32, #tpu.memory_space<vmem>>) attributes {dimension_semantics = [#tpu.dimension_semantics<parallel>], iteration_bounds = array<i64: 1>, scalar_prefetch = 0 : i64, scratch_operands = 0 : i64, tpu.core_type = #tpu.core_type<tc>, window_params = [{transform_indices = @transform_0, window_bounds = array<i64: 16, 1, 128>}, {transform_indices = @transform_1, window_bounds = array<i64: 16, 1, 128>}]} {
    %c0 = arith.constant 0 : index
    %c0_0 = arith.constant 0 : index
    %c0_1 = arith.constant 0 : index
    %0 = vector.load %arg1[%c0, %c0_0, %c0_1] : memref<16x1x128xi32, #tpu.memory_space<vmem>>, vector<16x1x128xi32>
    %cst = arith.constant dense<0> : vector<1x128xi32>
    %1 = vector.multi_reduction <add>, %0, %cst [0] : vector<16x1x128xi32> to vector<1x128xi32>
    %c0_i32 = arith.constant 0 : i32
    %2 = vector.broadcast %c0_i32 : i32 to vector<1x128xi32>
    %3 = arith.cmpi sge, %1, %2 : vector<1x128xi32>
    %4 = vector.shape_cast %3 : vector<1x128xi1> to vector<1x1x128xi1>
    %c0_i32_2 = arith.constant 0 : i32
    %5 = vector.broadcast %c0_i32_2 : i32 to vector<16x1x128xi32>
    %6 = vector.shape_cast %4 : vector<1x1x128xi1> to vector<1x1x128xi1>
    %7 = vector.broadcast %6 : vector<1x1x128xi1> to vector<16x1x128xi1>
    %8 = arith.select %7, %0, %5 : vector<16x1x128xi1>, vector<16x1x128xi32>
    %c0_3 = arith.constant 0 : index
    %c0_4 = arith.constant 0 : index
    %c0_5 = arith.constant 0 : index
    %9 = vector.load %arg2[%c0_3, %c0_4, %c0_5] : memref<16x1x128xi32, #tpu.memory_space<vmem>>, vector<16x1x128xi32>
    tpu.vector_store %arg2[%c0_3, %c0_4, %c0_5], %8 {strides = array<i32>} : memref<16x1x128xi32, #tpu.memory_space<vmem>>, vector<16x1x128xi32>,
    return
  }
  func.func @transform_0(%arg0: i32) -> (i32, i32, i32) {
    %c0_i32 = arith.constant 0 : i32
    %c0_i32_0 = arith.constant 0 : i32
    %c0_i32_1 = arith.constant 0 : i32
    return %c0_i32, %arg0, %c0_i32_0 : i32, i32, i32
  }
  func.func @transform_1(%arg0: i32) -> (i32, i32, i32) {
    %c0_i32 = arith.constant 0 : i32
    %c0_i32_0 = arith.constant 0 : i32
    %c0_i32_1 = arith.constant 0 : i32
    return %c0_i32, %arg0, %c0_i32_0 : i32, i32, i32
  }
}

module attributes {stable_mosaic.version = 11 : i64} {
  func.func @_block_relu_kernel(%arg0: i32, %arg1: memref<4x2x128xi32, #tpu.memory_space<vmem>>, %arg2: memref<4x2x128xi32, #tpu.memory_space<vmem>>) attributes {dimension_semantics = [#tpu.dimension_semantics<parallel>], iteration_bounds = array<i64: 1>, scalar_prefetch = 0 : i64, scratch_operands = 0 : i64, tpu.core_type = #tpu.core_type<tc>, window_params = [{transform_indices = @transform_0, window_bounds = array<i64: 4, 2, 128>}, {transform_indices = @transform_1, window_bounds = array<i64: 4, 2, 128>}]} {
    %c0 = arith.constant 0 : index
    %c0_0 = arith.constant 0 : index
    %c0_1 = arith.constant 0 : index
    %0 = vector.load %arg1[%c0, %c0_0, %c0_1] : memref<4x2x128xi32, #tpu.memory_space<vmem>>, vector<4x2x128xi32>
    %cst = arith.constant dense<0> : vector<2x128xi32>
    %1 = vector.multi_reduction <add>, %0, %cst [0] : vector<4x2x128xi32> to vector<2x128xi32>
    %c0_i32 = arith.constant 0 : i32
    %2 = vector.broadcast %c0_i32 : i32 to vector<2x128xi32>
    %3 = arith.cmpi sge, %1, %2 : vector<2x128xi32>
    %4 = vector.shape_cast %3 : vector<2x128xi1> to vector<1x2x128xi1>
    %c0_i32_2 = arith.constant 0 : i32
    %5 = vector.broadcast %c0_i32_2 : i32 to vector<4x2x128xi32>
    %6 = vector.shape_cast %4 : vector<1x2x128xi1> to vector<1x2x128xi1>
    %7 = vector.broadcast %6 : vector<1x2x128xi1> to vector<4x2x128xi1>
    %8 = arith.select %7, %0, %5 : vector<4x2x128xi1>, vector<4x2x128xi32>
    %c0_3 = arith.constant 0 : index
    %c0_4 = arith.constant 0 : index
    %c0_5 = arith.constant 0 : index
    %9 = vector.load %arg2[%c0_3, %c0_4, %c0_5] : memref<4x2x128xi32, #tpu.memory_space<vmem>>, vector<4x2x128xi32>
    tpu.vector_store %arg2[%c0_3, %c0_4, %c0_5], %8 {strides = array<i32>} : memref<4x2x128xi32, #tpu.memory_space<vmem>>, vector<4x2x128xi32>,
    return
  }
  func.func @transform_0(%arg0: i32) -> (i32, i32, i32) {
    %c0_i32 = arith.constant 0 : i32
    %c0_i32_0 = arith.constant 0 : i32
    %c0_i32_1 = arith.constant 0 : i32
    return %c0_i32, %arg0, %c0_i32_0 : i32, i32, i32
  }
  func.func @transform_1(%arg0: i32) -> (i32, i32, i32) {
    %c0_i32 = arith.constant 0 : i32
    %c0_i32_0 = arith.constant 0 : i32
    %c0_i32_1 = arith.constant 0 : i32
    return %c0_i32, %arg0, %c0_i32_0 : i32, i32, i32
  }
}

</mosaic_0001>

<bundles_post_ra>
// kernel: _lambda_.3
= control target key start
LH: loop header
LB: loop body
LE: loop exit
PB: predicated region body
PF: predicated region fallthrough
CT: control target
= control target key end

     0   :  { %v24_v0 = vlaneseq  ;;  %s256_s0 = inlined_call_operand.vmem [shape: s32[16,1,128], index: 0, kind: input, shape index: {}]   ;;  %s257_s1 = inlined_call_operand.vmem [shape: s32[16,1,128], index: 1, kind: output, shape index: {}]  }
   0x1   :  { %v8_v1 = vld [vmem:[%s256_s0] sm:$0x1]  ;;  %v9_v2 = vld [vmem:[%s256_s0 + $0x1] sm:$0x1]  ;;  %v10_v3 = vld [vmem:[%s256_s0 + $0x2] sm:$0x1] }
   0x2   :  { %v11_v4 = vld [vmem:[%s256_s0 + $0x3] sm:$0x1]  ;;  %v12_v5 = vld [vmem:[%s256_s0 + $0x4] sm:$0x1]  ;;  %v13_v6 = vld [vmem:[%s256_s0 + $0x5] sm:$0x1] }
   0x3   :  { %v14_v7 = vld [vmem:[%s256_s0 + $0x6] sm:$0x1]  ;;  %v15_v8 = vld [vmem:[%s256_s0 + $0x7] sm:$0x1]  ;;  %v16_v9 = vld [vmem:[%s256_s0 + $0x8] sm:$0x1] }
   0x4   :  { %v17_v10 = vld [vmem:[%s256_s0 + $0x9] sm:$0x1]  ;;  %v18_v11 = vld [vmem:[%s256_s0 + $0xa] sm:$0x1]  ;;  %vm141_vm0 = vcmp.lt.s32.totalorder %v24_v0, 128 }
   0x5   :  { %v19_v13 = vld [vmem:[%s256_s0 + $0xb] sm:$0x1]  ;;  %v28_v14 = vsel %vm141_vm0, %v8_v1, 0  ;;  %v29_v15 = vsel %vm141_vm0, %v9_v2, 0  ;;  %v30_v16 = vsel %vm141_vm0, %v10_v3, 0  ;;  %v31_v17 = vsel %vm141_vm0, %v11_v4, 0 }
   0x6   :  { %v20_v18 = vld [vmem:[%s256_s0 + $0xc] sm:$0x1]  ;;  %v32_v19 = vsel %vm141_vm0, %v12_v5, 0  ;;  %v34_v20 = vsel %vm141_vm0, %v13_v6, 0  ;;  %v36_v21 = vsel %vm141_vm0, %v14_v7, 0  ;;  %v38_v22 = vsel %vm141_vm0, %v15_v8, 0 }
   0x7   :  { %v21_v23 = vld [vmem:[%s256_s0 + $0xd] sm:$0x1]  ;;  %v22_v24 = vld [vmem:[%s256_s0 + $0xe] sm:$0x1]  ;;  %v23_v25 = vld [vmem:[%s256_s0 + $0xf] sm:$0x1]  ;;  %v33_v26 = vadd.s32 %v32_v19, %v28_v14  ;;  %v35_v27 = vadd.s32 %v34_v20, %v29_v15  ;;  %v37_v28 = vadd.s32 %v36_v21, %v30_v16  ;;  %v39_v29 = vadd.s32 %v38_v22, %v31_v17 }
   0x8   :  { %v40_v30 = vsel %vm141_vm0, %v16_v9, 0  ;;  %v42_v31 = vsel %vm141_vm0, %v17_v10, 0  ;;  %v44_v32 = vsel %vm141_vm0, %v18_v11, 0  ;;  %v46_v33 = vsel %vm141_vm0, %v19_v13, 0 }
   0x9   :  { %v41_v34 = vadd.s32 %v40_v30, %v33_v26  ;;  %v43_v35 = vadd.s32 %v42_v31, %v35_v27  ;;  %v45_v36 = vadd.s32 %v44_v32, %v37_v28  ;;  %v47_v37 = vadd.s32 %v46_v33, %v39_v29 }
   0xa   :  { %v48_v38 = vsel %vm141_vm0, %v20_v18, 0  ;;  %v50_v39 = vsel %vm141_vm0, %v21_v23, 0  ;;  %v52_v40 = vsel %vm141_vm0, %v22_v24, 0  ;;  %v54_v41 = vsel %vm141_vm0, %v23_v25, 0 }
   0xb   :  { %v49_v42 = vadd.s32 %v48_v38, %v41_v34  ;;  %v51_v43 = vadd.s32 %v50_v39, %v43_v35  ;;  %v53_v44 = vadd.s32 %v52_v40, %v45_v36  ;;  %v55_v45 = vadd.s32 %v54_v41, %v47_v37 }
   0xd   :  { %v56_v46 = vadd.s32 %v51_v43, %v49_v42  ;;  %v57_v47 = vadd.s32 %v55_v45, %v53_v44 }
   0xf   :  { %v58_v48 = vadd.s32 %v57_v47, %v56_v46 }
  0x11   :  { %vm59_vm1 = vcmp.ge.s32.totalorder %v58_v48, 0 }
  0x12   :  { %v62_v49 = vsel %vm59_vm1, %v8_v1, 0  ;;  %v63_v50 = vsel %vm59_vm1, %v9_v2, 0  ;;  %v64_v51 = vsel %vm59_vm1, %v10_v3, 0  ;;  %v65_v52 = vsel %vm59_vm1, %v11_v4, 0 }
  0x13   :  { %78 = vst [vmem:[%s257_s1] sm:$0x1] %v62_v49  ;;  %79 = vst [vmem:[%s257_s1 + $0x1] sm:$0x1] %v63_v50  ;;  %v66_v53 = vsel %vm59_vm1, %v12_v5, 0  ;;  %v67_v54 = vsel %vm59_vm1, %v13_v6, 0  ;;  %v68_v55 = vsel %vm59_vm1, %v14_v7, 0 }
  0x14   :  { %80 = vst [vmem:[%s257_s1 + $0x2] sm:$0x1] %v64_v51  ;;  %81 = vst [vmem:[%s257_s1 + $0x3] sm:$0x1] %v65_v52  ;;  %v69_v56 = vsel %vm59_vm1, %v15_v8, 0  ;;  %v70_v57 = vsel %vm59_vm1, %v16_v9, 0 }
  0x15   :  { %82 = vst [vmem:[%s257_s1 + $0x4] sm:$0x1] %v66_v53  ;;  %83 = vst [vmem:[%s257_s1 + $0x5] sm:$0x1] %v67_v54  ;;  %v71_v58 = vsel %vm59_vm1, %v17_v10, 0  ;;  %v72_v59 = vsel %vm59_vm1, %v18_v11, 0 }
  0x16   :  { %84 = vst [vmem:[%s257_s1 + $0x6] sm:$0x1] %v68_v55  ;;  %85 = vst [vmem:[%s257_s1 + $0x7] sm:$0x1] %v69_v56  ;;  %v73_v60 = vsel %vm59_vm1, %v19_v13, 0  ;;  %v74_v61 = vsel %vm59_vm1, %v20_v18, 0 }
  0x17   :  { %86 = vst [vmem:[%s257_s1 + $0x8] sm:$0x1] %v70_v57  ;;  %87 = vst [vmem:[%s257_s1 + $0x9] sm:$0x1] %v71_v58  ;;  %v75_v62 = vsel %vm59_vm1, %v21_v23, 0  ;;  %v76_v63 = vsel %vm59_vm1, %v22_v24, 0 }
  0x18   :  { %88 = vst [vmem:[%s257_s1 + $0xa] sm:$0x1] %v72_v59  ;;  %89 = vst [vmem:[%s257_s1 + $0xb] sm:$0x1] %v73_v60  ;;  %v77_v0 = vsel %vm59_vm1, %v23_v25, 0 }
  0x19   :  { %90 = vst [vmem:[%s257_s1 + $0xc] sm:$0x1] %v74_v61  ;;  %91 = vst [vmem:[%s257_s1 + $0xd] sm:$0x1] %v75_v62 }
  0x1a   :  { %92 = vst [vmem:[%s257_s1 + $0xe] sm:$0x1] %v76_v63  ;;  %93 = vst [vmem:[%s257_s1 + $0xf] sm:$0x1] %v77_v0 }

// kernel: _lambda_.2
= control target key start
LH: loop header
LB: loop body
LE: loop exit
PB: predicated region body
PF: predicated region fallthrough
CT: control target
= control target key end

     0   :  { %vm12_vm0 = vcmask 1041408   ;;  %s69_s0 = inlined_call_operand.vmem [shape: s32[4,2,128], index: 0, kind: input, shape index: {}]   ;;  %s70_s1 = inlined_call_operand.vmem [shape: s32[4,2,128], index: 1, kind: output, shape index: {}]  }
   0x1   :  { %v8_v0 = vld [vmem:[%s69_s0] sm:$0x3]  ;;  %v9_v1 = vld [vmem:[%s69_s0 + $0x2] sm:$0x3]  ;;  %v10_v2 = vld [vmem:[%s69_s0 + $0x4] sm:$0x3] }
   0x2   :  { %v11_v3 = vld [vmem:[%s69_s0 + $0x6] sm:$0x3]  ;;  %v13_v4 = vsel %vm12_vm0, %v8_v0, 0  ;;  %v14_v5 = vsel %vm12_vm0, %v9_v1, 0  ;;  %v15_v6 = vsel %vm12_vm0, %v10_v2, 0 }
   0x3   :  { %v16_v7 = vsel %vm12_vm0, %v11_v3, 0  ;;  %v17_v8 = vadd.s32 %v14_v5, %v13_v4 }
   0x4   :  { %v18_v9 = vadd.s32 %v16_v7, %v15_v6 }
   0x6   :  { %v19_v10 = vadd.s32 %v18_v9, %v17_v8 }
   0x8   :  { %vm20_vm1 = vcmp.ge.s32.totalorder %v19_v10, 0 }
   0x9   :  { %v23_v11 = vsel %vm20_vm1, %v8_v0, 0  ;;  %v24_v12 = vsel %vm20_vm1, %v9_v1, 0  ;;  %v25_v13 = vsel %vm20_vm1, %v10_v2, 0  ;;  %v26_v14 = vsel %vm20_vm1, %v11_v3, 0 }
   0xa   :  { %27 = vst [vmem:[%s70_s1] sm:$0x3] %v23_v11  ;;  %28 = vst [vmem:[%s70_s1 + $0x2] sm:$0x3] %v24_v12 }
   0xb   :  { %29 = vst [vmem:[%s70_s1 + $0x4] sm:$0x3] %v25_v13  ;;  %30 = vst [vmem:[%s70_s1 + $0x6] sm:$0x3] %v26_v14 }

</bundles_post_ra>
